<compile_context>
chip_gen: v6e
topology: v6e:2x2x1
jax: 0.10.0
libtpu: 0.0.40
codegen_flags: <defaults>
</compile_context>

<pallas_src>
import functools

import numpy as np
import jax
import jax.numpy as jnp
from jax.experimental import pallas as pl
from jax.experimental.pallas import tpu as pltpu


# ----------------------------- fused Pallas kernel -----------------------------

def _mha_fused_kernel(*refs, B, H, d, Lq, Lk, need_transform, eps):
    if need_transform:
        (xq_ref, xk_ref, xv_ref, wt_ref, wq_ref, wk_ref, wv_ref, fc_ref,
         out_ref, attn_ref) = refs
    else:
        (xq_ref, xk_ref, xv_ref, wq_ref, wk_ref, wv_ref, fc_ref,
         out_ref, attn_ref) = refs
        wt_ref = None

    f32 = jnp.float32
    E = H * d

    xq = xq_ref[...].astype(f32)                         # [Mq, Cq], row = s*B + b
    if need_transform:
        xq = jnp.dot(xq, wt_ref[...], preferred_element_type=f32)   # [Mq, E]
    residual = xq                                         # seq-first flat layout

    scale = 1.0 / float(np.sqrt(d))
    # Scale Q once (Lq*d elements) instead of scaling every [Lq, Lk] score tile.
    q = jnp.dot(xq, wq_ref[...], preferred_element_type=f32) * scale           # [Mq, E]
    k = jnp.dot(xk_ref[...].astype(f32), wk_ref[...], preferred_element_type=f32)  # [Mk, E]
    v = jnp.dot(xv_ref[...].astype(f32), wv_ref[...], preferred_element_type=f32)  # [Mk, E]

    # torch: proj.view(B, -1, H, d).transpose(1, 2).  The flat rows are simply
    # reinterpreted as (b, l) pairs, so only leading-dim reshapes are needed.
    q3 = q.reshape(B, Lq, E)
    k3 = k.reshape(B, Lk, E)
    v3 = v.reshape(B, Lk, E)

    # fc output accumulator (rows in (b, l) order).  fc is folded into the head
    # loop so the per-head context never hits a column-sliced VMEM scratch.
    fco = jnp.zeros((B * Lq, E), f32)

    for h in range(H):                                    # H is small & static
        lo = h * d
        qh = q3[:, :, lo:lo + d]                          # [B, Lq, d]
        kh = k3[:, :, lo:lo + d]                          # [B, Lk, d]
        vh = v3[:, :, lo:lo + d]                          # [B, Lk, d]

        s = jnp.einsum("bqd,bkd->bqk", qh, kh,
                       preferred_element_type=f32)        # [B, Lq, Lk]
        m = jnp.max(s, axis=-1, keepdims=True)
        p = jnp.exp(s - m)
        denom = jnp.sum(p, axis=-1, keepdims=True)
        attn_h = p * pl.reciprocal(denom, approx=False)   # exact softmax (1e-5 tol)

        # attn_ref holds the raw row-major [B, H, Lq, Lk] order as a
        # [B, H*Lq, Lk] slab: one contiguous sublane-block store per head.
        attn_ref[:, h * Lq:(h + 1) * Lq, :] = attn_h.astype(attn_ref.dtype)

        ctx_h = jnp.einsum("bqk,bkd->bqd", attn_h, vh,
                           preferred_element_type=f32)    # [B, Lq, d]
        fco = fco + jnp.dot(ctx_h.reshape(B * Lq, d), fc_ref[lo:lo + d, :],
                            preferred_element_type=f32)   # [B*Lq, E]

    # torch .transpose(0, 1): permute rows from (b*Lq + l) order back to the
    # seq-first (l*B + b) order with a single transpose (no per-row copies).
    fco_sf = pltpu.einshape("ble->lbe", fco.reshape(B, Lq, E)).reshape(Lq * B, E)

    # residual add + LayerNorm (fresh nn.LayerNorm: gamma=1, beta=0, biased var).
    y = fco_sf + residual
    mean = jnp.mean(y, axis=-1, keepdims=True)
    var = jnp.mean((y - mean) ** 2, axis=-1, keepdims=True)
    out_ref[...] = ((y - mean) * jax.lax.rsqrt(var + eps)).astype(out_ref.dtype)


# ----------------------------- module forward (wrapper) -----------------------------

def multi_head_attention_forward(input_Q, input_K, input_V, params, n_heads):
    """Exact port of MultiHeadAttention.forward (attn_mask=None path), fully fused."""
    E = params["W_Q"].shape[0]
    H = n_heads
    d = E // H

    if input_Q.ndim == 2:
        input_Q = input_Q[None]
    S, B = input_Q.shape[0], input_Q.shape[1]            # batch_size = size(1), as in torch
    Cq = input_Q.shape[-1]
    need_transform = (Cq != input_K.shape[-1])

    Mq = S * B
    Lq = Mq // B                                         # == S (torch .view(B, -1, H, d))
    Mk = int(np.prod(input_K.shape[:-1]))
    Mv = int(np.prod(input_V.shape[:-1]))
    assert Mk == Mv and Mk % B == 0
    Lk = Mk // B

    # torch .view() on contiguous tensors == row-major reshape.
    xq = input_Q.reshape(Mq, Cq)
    xk = input_K.reshape(Mk, E)
    xv = input_V.reshape(Mv, E)

    # Weights pre-transposed once on the host so every in-kernel matmul is a
    # plain [M,K] @ [K,N] MXU tile (nn.Linear stores [out, in]).
    args = [xq, xk, xv]
    if need_transform:
        args.append(params["transform"].T)               # only DMA'd when actually used
    args += [params["W_Q"].T, params["W_K"].T, params["W_V"].T, params["fc"].T]

    kernel = functools.partial(_mha_fused_kernel, B=B, H=H, d=d, Lq=Lq, Lk=Lk,
                               need_transform=need_transform, eps=1e-5)

    flops = (2 * Mq * Cq * E * int(need_transform)
             + 2 * (Mq + 2 * Mk) * E * E                 # Q/K/V projections
             + 4 * B * H * Lq * Lk * d                   # QK^T and attn @ V
             + 2 * B * Lq * E * E)                       # fc (folded per head)
    bytes_accessed = 4 * (Mq * Cq + 2 * Mk * E + Mq * E + B * H * Lq * Lk
                          + Cq * E * int(need_transform) + 4 * E * E)
    cost = pl.CostEstimate(flops=int(flops),
                           transcendentals=int(B * H * Lq * Lk + 2 * Mq),
                           bytes_accessed=int(bytes_accessed))

    vmem_spec = pl.BlockSpec(memory_space=pltpu.MemorySpace.VMEM)
    out_flat, attn_raw = pl.pallas_call(
        kernel,
        in_specs=[vmem_spec] * len(args),
        out_specs=(vmem_spec, vmem_spec),
        out_shape=(jax.ShapeDtypeStruct((Mq, E), input_Q.dtype),
                   jax.ShapeDtypeStruct((B, H * Lq, Lk), jnp.float32)),
        compiler_params=pltpu.CompilerParams(vmem_limit_bytes=32 * 1024 * 1024),
        cost_estimate=cost,
    )(*args)

    out = out_flat.reshape(Lq, B, E)                     # [S, B, E] seq-first
    # attn_raw flat order == torch's [B, H, Lq, Lk]; torch then does a raw
    # reshape to (Lq, B*H, Lk), which is layout-identical here.
    attn = attn_raw.reshape(Lq, B * H, Lk)
    return out, attn


# ----------------------------- pure-JAX reference -----------------------------

def reference_forward(input_Q, input_K, input_V, params, n_heads):
    embed_dim = params["W_Q"].shape[0]
    d = embed_dim // n_heads
    if input_Q.ndim == 2:
        input_Q = input_Q[None]
    if input_Q.shape[-1] != input_K.shape[-1]:
        input_Q = input_Q @ params["transform"].T
    residual = input_Q
    batch_size = input_Q.shape[1]
    H = n_heads
    Q = (input_Q @ params["W_Q"].T).reshape(batch_size, -1, H, d).transpose(0, 2, 1, 3)
    K = (input_K @ params["W_K"].T).reshape(batch_size, -1, H, d).transpose(0, 2, 1, 3)
    V = (input_V @ params["W_V"].T).reshape(batch_size, -1, H, d).transpose(0, 2, 1, 3)
    scores = jnp.einsum("bhqd,bhkd->bhqk", Q, K) / np.sqrt(d)
    attn = jax.nn.softmax(scores, axis=-1)
    context = jnp.einsum("bhqk,bhkd->bhqd", attn, V)
    context = context.transpose(0, 2, 1, 3).reshape(batch_size, -1, H * d).transpose(1, 0, 2)
    output = context @ params["fc"].T
    attn = attn.reshape(attn.shape[2], -1, attn.shape[3])
    y = output + residual
    mean = jnp.mean(y, axis=-1, keepdims=True)
    var = jnp.mean((y - mean) ** 2, axis=-1, keepdims=True)
    out = (y - mean) / jnp.sqrt(var + 1e-5)
    return out, attn


# ----------------------------- main -----------------------------

if __name__ == "__main__":
    cand_dim, embed_dim, n_heads = 16, 32, 4
    S, B = 8, 2

    key = jax.random.PRNGKey(0)
    ks = jax.random.split(key, 8)
    params = {
        "transform": jax.random.normal(ks[0], (embed_dim, cand_dim), jnp.float32) / np.sqrt(cand_dim),
        "W_Q": jax.random.normal(ks[1], (embed_dim, embed_dim), jnp.float32) / np.sqrt(embed_dim),
        "W_K": jax.random.normal(ks[2], (embed_dim, embed_dim), jnp.float32) / np.sqrt(embed_dim),
        "W_V": jax.random.normal(ks[3], (embed_dim, embed_dim), jnp.float32) / np.sqrt(embed_dim),
        "fc":  jax.random.normal(ks[4], (embed_dim, embed_dim), jnp.float32) / np.sqrt(embed_dim),
    }
    input_Q = jax.random.normal(ks[5], (S, B, cand_dim), jnp.float32)
    input_K = jax.random.normal(ks[6], (S, B, embed_dim), jnp.float32)
    input_V = jax.random.normal(ks[7], (S, B, embed_dim), jnp.float32)

    out, attn = multi_head_attention_forward(input_Q, input_K, input_V, params, n_heads)
    out = jax.block_until_ready(out)
    attn = jax.block_until_ready(attn)

    ref_out, ref_attn = reference_forward(input_Q, input_K, input_V, params, n_heads)
    assert out.shape == (S, B, embed_dim), out.shape
    assert attn.shape == (S, B * n_heads, S), attn.shape
    np.testing.assert_allclose(np.asarray(out), np.asarray(ref_out), atol=1e-4, rtol=1e-4)
    np.testing.assert_allclose(np.asarray(attn), np.asarray(ref_attn), atol=1e-5, rtol=1e-5)

    print("KERNEL_OK")
</pallas_src>

<mosaic_0001>
module attributes {stable_mosaic.version = 11 : i64} {
  func.func @_mha_fused_kernel(%arg0: memref<16x16xf32, #tpu.memory_space<vmem>>, %arg1: memref<16x32xf32, #tpu.memory_space<vmem>>, %arg2: memref<16x32xf32, #tpu.memory_space<vmem>>, %arg3: memref<16x32xf32, #tpu.memory_space<vmem>>, %arg4: memref<32x32xf32, #tpu.memory_space<vmem>>, %arg5: memref<32x32xf32, #tpu.memory_space<vmem>>, %arg6: memref<32x32xf32, #tpu.memory_space<vmem>>, %arg7: memref<32x32xf32, #tpu.memory_space<vmem>>, %arg8: memref<16x32xf32, #tpu.memory_space<vmem>>, %arg9: memref<2x32x8xf32, #tpu.memory_space<vmem>>) attributes {dimension_semantics = [], scalar_prefetch = 0 : i64, scratch_operands = 0 : i64, tpu.core_type = #tpu.core_type<tc>} {
    %c0 = arith.constant 0 : index
    %c0_0 = arith.constant 0 : index
    %0 = vector.load %arg0[%c0, %c0_0] : memref<16x16xf32, #tpu.memory_space<vmem>>, vector<16x16xf32>
    %c0_1 = arith.constant 0 : index
    %c0_2 = arith.constant 0 : index
    %1 = vector.load %arg3[%c0_1, %c0_2] : memref<16x32xf32, #tpu.memory_space<vmem>>, vector<16x32xf32>
    %cst = arith.constant dense<0.000000e+00> : vector<16x32xf32>
    %2 = tpu.matmul %0, %1, %cst {dimension_numbers = #tpu.dot_dimension_numbers<[1], [0], [0], [1], [0, 0, 1, 1], [], []>} : vector<16x16xf32>, vector<16x32xf32>, vector<16x32xf32> -> vector<16x32xf32>
    %c0_3 = arith.constant 0 : index
    %c0_4 = arith.constant 0 : index
    %3 = vector.load %arg4[%c0_3, %c0_4] : memref<32x32xf32, #tpu.memory_space<vmem>>, vector<32x32xf32>
    %cst_5 = arith.constant dense<0.000000e+00> : vector<16x32xf32>
    %4 = tpu.matmul %2, %3, %cst_5 {dimension_numbers = #tpu.dot_dimension_numbers<[1], [0], [0], [1], [0, 0, 1, 1], [], []>} : vector<16x32xf32>, vector<32x32xf32>, vector<16x32xf32> -> vector<16x32xf32>
    %cst_6 = arith.constant 0.353553385 : f32
    %5 = vector.broadcast %cst_6 : f32 to vector<16x32xf32>
    %6 = arith.mulf %4, %5 : vector<16x32xf32>
    %c0_7 = arith.constant 0 : index
    %c0_8 = arith.constant 0 : index
    %7 = vector.load %arg1[%c0_7, %c0_8] : memref<16x32xf32, #tpu.memory_space<vmem>>, vector<16x32xf32>
    %c0_9 = arith.constant 0 : index
    %c0_10 = arith.constant 0 : index
    %8 = vector.load %arg5[%c0_9, %c0_10] : memref<32x32xf32, #tpu.memory_space<vmem>>, vector<32x32xf32>
    %cst_11 = arith.constant dense<0.000000e+00> : vector<16x32xf32>
    %9 = tpu.matmul %7, %8, %cst_11 {dimension_numbers = #tpu.dot_dimension_numbers<[1], [0], [0], [1], [0, 0, 1, 1], [], []>} : vector<16x32xf32>, vector<32x32xf32>, vector<16x32xf32> -> vector<16x32xf32>
    %c0_12 = arith.constant 0 : index
    %c0_13 = arith.constant 0 : index
    %10 = vector.load %arg2[%c0_12, %c0_13] : memref<16x32xf32, #tpu.memory_space<vmem>>, vector<16x32xf32>
    %c0_14 = arith.constant 0 : index
    %c0_15 = arith.constant 0 : index
    %11 = vector.load %arg6[%c0_14, %c0_15] : memref<32x32xf32, #tpu.memory_space<vmem>>, vector<32x32xf32>
    %cst_16 = arith.constant dense<0.000000e+00> : vector<16x32xf32>
    %12 = tpu.matmul %10, %11, %cst_16 {dimension_numbers = #tpu.dot_dimension_numbers<[1], [0], [0], [1], [0, 0, 1, 1], [], []>} : vector<16x32xf32>, vector<32x32xf32>, vector<16x32xf32> -> vector<16x32xf32>
    %13 = vector.shape_cast %6 : vector<16x32xf32> to vector<2x8x32xf32>
    %14 = vector.shape_cast %9 : vector<16x32xf32> to vector<2x8x32xf32>
    %15 = vector.shape_cast %12 : vector<16x32xf32> to vector<2x8x32xf32>
    %cst_17 = arith.constant 0.000000e+00 : f32
    %16 = vector.broadcast %cst_17 : f32 to vector<16x32xf32>
    %17 = vector.extract_strided_slice %13 {offsets = [0, 0, 0], sizes = [2, 8, 8], strides = [1, 1, 1]} : vector<2x8x32xf32> to vector<2x8x8xf32>
    %18 = vector.extract_strided_slice %14 {offsets = [0, 0, 0], sizes = [2, 8, 8], strides = [1, 1, 1]} : vector<2x8x32xf32> to vector<2x8x8xf32>
    %19 = vector.extract_strided_slice %15 {offsets = [0, 0, 0], sizes = [2, 8, 8], strides = [1, 1, 1]} : vector<2x8x32xf32> to vector<2x8x8xf32>
    "tpu.trace_start"() <{level = 10 : i32, message = "bqd,bkd->bqk"}> : () -> ()
    %cst_18 = arith.constant dense<0.000000e+00> : vector<2x8x8xf32>
    %20 = tpu.matmul %17, %18, %cst_18 {dimension_numbers = #tpu.dot_dimension_numbers<[2], [2], [1], [1], [0, 0, 0, 1, 1, 1], [0], [0]>} : vector<2x8x8xf32>, vector<2x8x8xf32>, vector<2x8x8xf32> -> vector<2x8x8xf32>
    "tpu.trace_stop"() : () -> ()
    %cst_19 = arith.constant dense<0xFF800000> : vector<2x8xf32>
    %21 = vector.multi_reduction <maximumf>, %20, %cst_19 [2] : vector<2x8x8xf32> to vector<2x8xf32>
    %22 = vector.shape_cast %21 : vector<2x8xf32> to vector<2x8x1xf32>
    %23 = vector.broadcast %22 : vector<2x8x1xf32> to vector<2x8x8xf32>
    %24 = arith.subf %20, %23 : vector<2x8x8xf32>
    %25 = math.exp %24 : vector<2x8x8xf32>
    %cst_20 = arith.constant dense<0.000000e+00> : vector<2x8xf32>
    %26 = vector.multi_reduction <add>, %25, %cst_20 [2] : vector<2x8x8xf32> to vector<2x8xf32>
    %27 = vector.shape_cast %26 : vector<2x8xf32> to vector<2x8x1xf32>
    %28 = tpu.reciprocal %27 : vector<2x8x1xf32> -> vector<2x8x1xf32>
    %29 = vector.broadcast %28 : vector<2x8x1xf32> to vector<2x8x8xf32>
    %30 = arith.mulf %25, %29 : vector<2x8x8xf32>
    %c0_21 = arith.constant 0 : index
    %c0_22 = arith.constant 0 : index
    %c0_23 = arith.constant 0 : index
    %31 = vector.load %arg9[%c0_21, %c0_22, %c0_23] : memref<2x32x8xf32, #tpu.memory_space<vmem>>, vector<2x8x8xf32>
    tpu.vector_store %arg9[%c0_21, %c0_22, %c0_23], %30 {strides = array<i32>} : memref<2x32x8xf32, #tpu.memory_space<vmem>>, vector<2x8x8xf32>,
    "tpu.trace_start"() <{level = 10 : i32, message = "bqk,bkd->bqd"}> : () -> ()
    %cst_24 = arith.constant dense<0.000000e+00> : vector<2x8x8xf32>
    %32 = tpu.matmul %30, %19, %cst_24 {dimension_numbers = #tpu.dot_dimension_numbers<[2], [1], [1], [2], [0, 0, 0, 1, 1, 2], [0], [0]>} : vector<2x8x8xf32>, vector<2x8x8xf32>, vector<2x8x8xf32> -> vector<2x8x8xf32>
    "tpu.trace_stop"() : () -> ()
    %33 = vector.shape_cast %32 : vector<2x8x8xf32> to vector<16x8xf32>
    %c0_25 = arith.constant 0 : index
    %c0_26 = arith.constant 0 : index
    %34 = vector.load %arg7[%c0_25, %c0_26] : memref<32x32xf32, #tpu.memory_space<vmem>>, vector<8x32xf32>
    %cst_27 = arith.constant dense<0.000000e+00> : vector<16x32xf32>
    %35 = tpu.matmul %33, %34, %cst_27 {dimension_numbers = #tpu.dot_dimension_numbers<[1], [0], [0], [1], [0, 0, 1, 1], [], []>} : vector<16x8xf32>, vector<8x32xf32>, vector<16x32xf32> -> vector<16x32xf32>
    %36 = arith.addf %16, %35 : vector<16x32xf32>
    %37 = vector.extract_strided_slice %13 {offsets = [0, 0, 8], sizes = [2, 8, 8], strides = [1, 1, 1]} : vector<2x8x32xf32> to vector<2x8x8xf32>
    %38 = vector.extract_strided_slice %14 {offsets = [0, 0, 8], sizes = [2, 8, 8], strides = [1, 1, 1]} : vector<2x8x32xf32> to vector<2x8x8xf32>
    %39 = vector.extract_strided_slice %15 {offsets = [0, 0, 8], sizes = [2, 8, 8], strides = [1, 1, 1]} : vector<2x8x32xf32> to vector<2x8x8xf32>
    "tpu.trace_start"() <{level = 10 : i32, message = "bqd,bkd->bqk"}> : () -> ()
    %cst_28 = arith.constant dense<0.000000e+00> : vector<2x8x8xf32>
    %40 = tpu.matmul %37, %38, %cst_28 {dimension_numbers = #tpu.dot_dimension_numbers<[2], [2], [1], [1], [0, 0, 0, 1, 1, 1], [0], [0]>} : vector<2x8x8xf32>, vector<2x8x8xf32>, vector<2x8x8xf32> -> vector<2x8x8xf32>
    "tpu.trace_stop"() : () -> ()
    %cst_29 = arith.constant dense<0xFF800000> : vector<2x8xf32>
    %41 = vector.multi_reduction <maximumf>, %40, %cst_29 [2] : vector<2x8x8xf32> to vector<2x8xf32>
    %42 = vector.shape_cast %41 : vector<2x8xf32> to vector<2x8x1xf32>
    %43 = vector.broadcast %42 : vector<2x8x1xf32> to vector<2x8x8xf32>
    %44 = arith.subf %40, %43 : vector<2x8x8xf32>
    %45 = math.exp %44 : vector<2x8x8xf32>
    %cst_30 = arith.constant dense<0.000000e+00> : vector<2x8xf32>
    %46 = vector.multi_reduction <add>, %45, %cst_30 [2] : vector<2x8x8xf32> to vector<2x8xf32>
    %47 = vector.shape_cast %46 : vector<2x8xf32> to vector<2x8x1xf32>
    %48 = tpu.reciprocal %47 : vector<2x8x1xf32> -> vector<2x8x1xf32>
    %49 = vector.broadcast %48 : vector<2x8x1xf32> to vector<2x8x8xf32>
    %50 = arith.mulf %45, %49 : vector<2x8x8xf32>
    %c0_31 = arith.constant 0 : index
    %c8 = arith.constant 8 : index
    %c0_32 = arith.constant 0 : index
    %51 = vector.load %arg9[%c0_31, %c8, %c0_32] : memref<2x32x8xf32, #tpu.memory_space<vmem>>, vector<2x8x8xf32>
    tpu.vector_store %arg9[%c0_31, %c8, %c0_32], %50 {strides = array<i32>} : memref<2x32x8xf32, #tpu.memory_space<vmem>>, vector<2x8x8xf32>,
    "tpu.trace_start"() <{level = 10 : i32, message = "bqk,bkd->bqd"}> : () -> ()
    %cst_33 = arith.constant dense<0.000000e+00> : vector<2x8x8xf32>
    %52 = tpu.matmul %50, %39, %cst_33 {dimension_numbers = #tpu.dot_dimension_numbers<[2], [1], [1], [2], [0, 0, 0, 1, 1, 2], [0], [0]>} : vector<2x8x8xf32>, vector<2x8x8xf32>, vector<2x8x8xf32> -> vector<2x8x8xf32>
    "tpu.trace_stop"() : () -> ()
    %53 = vector.shape_cast %52 : vector<2x8x8xf32> to vector<16x8xf32>
    %c8_34 = arith.constant 8 : index
    %c0_35 = arith.constant 0 : index
    %54 = vector.load %arg7[%c8_34, %c0_35] : memref<32x32xf32, #tpu.memory_space<vmem>>, vector<8x32xf32>
    %cst_36 = arith.constant dense<0.000000e+00> : vector<16x32xf32>
    %55 = tpu.matmul %53, %54, %cst_36 {dimension_numbers = #tpu.dot_dimension_numbers<[1], [0], [0], [1], [0, 0, 1, 1], [], []>} : vector<16x8xf32>, vector<8x32xf32>, vector<16x32xf32> -> vector<16x32xf32>
    %56 = arith.addf %36, %55 : vector<16x32xf32>
    %57 = vector.extract_strided_slice %13 {offsets = [0, 0, 16], sizes = [2, 8, 8], strides = [1, 1, 1]} : vector<2x8x32xf32> to vector<2x8x8xf32>
    %58 = vector.extract_strided_slice %14 {offsets = [0, 0, 16], sizes = [2, 8, 8], strides = [1, 1, 1]} : vector<2x8x32xf32> to vector<2x8x8xf32>
    %59 = vector.extract_strided_slice %15 {offsets = [0, 0, 16], sizes = [2, 8, 8], strides = [1, 1, 1]} : vector<2x8x32xf32> to vector<2x8x8xf32>
    "tpu.trace_start"() <{level = 10 : i32, message = "bqd,bkd->bqk"}> : () -> ()
    %cst_37 = arith.constant dense<0.000000e+00> : vector<2x8x8xf32>
    %60 = tpu.matmul %57, %58, %cst_37 {dimension_numbers = #tpu.dot_dimension_numbers<[2], [2], [1], [1], [0, 0, 0, 1, 1, 1], [0], [0]>} : vector<2x8x8xf32>, vector<2x8x8xf32>, vector<2x8x8xf32> -> vector<2x8x8xf32>
    "tpu.trace_stop"() : () -> ()
    %cst_38 = arith.constant dense<0xFF800000> : vector<2x8xf32>
    %61 = vector.multi_reduction <maximumf>, %60, %cst_38 [2] : vector<2x8x8xf32> to vector<2x8xf32>
    %62 = vector.shape_cast %61 : vector<2x8xf32> to vector<2x8x1xf32>
    %63 = vector.broadcast %62 : vector<2x8x1xf32> to vector<2x8x8xf32>
    %64 = arith.subf %60, %63 : vector<2x8x8xf32>
    %65 = math.exp %64 : vector<2x8x8xf32>
    %cst_39 = arith.constant dense<0.000000e+00> : vector<2x8xf32>
    %66 = vector.multi_reduction <add>, %65, %cst_39 [2] : vector<2x8x8xf32> to vector<2x8xf32>
    %67 = vector.shape_cast %66 : vector<2x8xf32> to vector<2x8x1xf32>
    %68 = tpu.reciprocal %67 : vector<2x8x1xf32> -> vector<2x8x1xf32>
    %69 = vector.broadcast %68 : vector<2x8x1xf32> to vector<2x8x8xf32>
    %70 = arith.mulf %65, %69 : vector<2x8x8xf32>
    %c0_40 = arith.constant 0 : index
    %c16 = arith.constant 16 : index
    %c0_41 = arith.constant 0 : index
    %71 = vector.load %arg9[%c0_40, %c16, %c0_41] : memref<2x32x8xf32, #tpu.memory_space<vmem>>, vector<2x8x8xf32>
    tpu.vector_store %arg9[%c0_40, %c16, %c0_41], %70 {strides = array<i32>} : memref<2x32x8xf32, #tpu.memory_space<vmem>>, vector<2x8x8xf32>,
    "tpu.trace_start"() <{level = 10 : i32, message = "bqk,bkd->bqd"}> : () -> ()
    %cst_42 = arith.constant dense<0.000000e+00> : vector<2x8x8xf32>
    %72 = tpu.matmul %70, %59, %cst_42 {dimension_numbers = #tpu.dot_dimension_numbers<[2], [1], [1], [2], [0, 0, 0, 1, 1, 2], [0], [0]>} : vector<2x8x8xf32>, vector<2x8x8xf32>, vector<2x8x8xf32> -> vector<2x8x8xf32>
    "tpu.trace_stop"() : () -> ()
    %73 = vector.shape_cast %72 : vector<2x8x8xf32> to vector<16x8xf32>
    %c16_43 = arith.constant 16 : index
    %c0_44 = arith.constant 0 : index
    %74 = vector.load %arg7[%c16_43, %c0_44] : memref<32x32xf32, #tpu.memory_space<vmem>>, vector<8x32xf32>
    %cst_45 = arith.constant dense<0.000000e+00> : vector<16x32xf32>
    %75 = tpu.matmul %73, %74, %cst_45 {dimension_numbers = #tpu.dot_dimension_numbers<[1], [0], [0], [1], [0, 0, 1, 1], [], []>} : vector<16x8xf32>, vector<8x32xf32>, vector<16x32xf32> -> vector<16x32xf32>
    %76 = arith.addf %56, %75 : vector<16x32xf32>
    %77 = vector.extract_strided_slice %13 {offsets = [0, 0, 24], sizes = [2, 8, 8], strides = [1, 1, 1]} : vector<2x8x32xf32> to vector<2x8x8xf32>
    %78 = vector.extract_strided_slice %14 {offsets = [0, 0, 24], sizes = [2, 8, 8], strides = [1, 1, 1]} : vector<2x8x32xf32> to vector<2x8x8xf32>
    %79 = vector.extract_strided_slice %15 {offsets = [0, 0, 24], sizes = [2, 8, 8], strides = [1, 1, 1]} : vector<2x8x32xf32> to vector<2x8x8xf32>
    "tpu.trace_start"() <{level = 10 : i32, message = "bqd,bkd->bqk"}> : () -> ()
    %cst_46 = arith.constant dense<0.000000e+00> : vector<2x8x8xf32>
    %80 = tpu.matmul %77, %78, %cst_46 {dimension_numbers = #tpu.dot_dimension_numbers<[2], [2], [1], [1], [0, 0, 0, 1, 1, 1], [0], [0]>} : vector<2x8x8xf32>, vector<2x8x8xf32>, vector<2x8x8xf32> -> vector<2x8x8xf32>
    "tpu.trace_stop"() : () -> ()
    %cst_47 = arith.constant dense<0xFF800000> : vector<2x8xf32>
    %81 = vector.multi_reduction <maximumf>, %80, %cst_47 [2] : vector<2x8x8xf32> to vector<2x8xf32>
    %82 = vector.shape_cast %81 : vector<2x8xf32> to vector<2x8x1xf32>
    %83 = vector.broadcast %82 : vector<2x8x1xf32> to vector<2x8x8xf32>
    %84 = arith.subf %80, %83 : vector<2x8x8xf32>
    %85 = math.exp %84 : vector<2x8x8xf32>
    %cst_48 = arith.constant dense<0.000000e+00> : vector<2x8xf32>
    %86 = vector.multi_reduction <add>, %85, %cst_48 [2] : vector<2x8x8xf32> to vector<2x8xf32>
    %87 = vector.shape_cast %86 : vector<2x8xf32> to vector<2x8x1xf32>
    %88 = tpu.reciprocal %87 : vector<2x8x1xf32> -> vector<2x8x1xf32>
    %89 = vector.broadcast %88 : vector<2x8x1xf32> to vector<2x8x8xf32>
    %90 = arith.mulf %85, %89 : vector<2x8x8xf32>
    %c0_49 = arith.constant 0 : index
    %c24 = arith.constant 24 : index
    %c0_50 = arith.constant 0 : index
    %91 = vector.load %arg9[%c0_49, %c24, %c0_50] : memref<2x32x8xf32, #tpu.memory_space<vmem>>, vector<2x8x8xf32>
    tpu.vector_store %arg9[%c0_49, %c24, %c0_50], %90 {strides = array<i32>} : memref<2x32x8xf32, #tpu.memory_space<vmem>>, vector<2x8x8xf32>,
    "tpu.trace_start"() <{level = 10 : i32, message = "bqk,bkd->bqd"}> : () -> ()
    %cst_51 = arith.constant dense<0.000000e+00> : vector<2x8x8xf32>
    %92 = tpu.matmul %90, %79, %cst_51 {dimension_numbers = #tpu.dot_dimension_numbers<[2], [1], [1], [2], [0, 0, 0, 1, 1, 2], [0], [0]>} : vector<2x8x8xf32>, vector<2x8x8xf32>, vector<2x8x8xf32> -> vector<2x8x8xf32>
    "tpu.trace_stop"() : () -> ()
    %93 = vector.shape_cast %92 : vector<2x8x8xf32> to vector<16x8xf32>
    %c24_52 = arith.constant 24 : index
    %c0_53 = arith.constant 0 : index
    %94 = vector.load %arg7[%c24_52, %c0_53] : memref<32x32xf32, #tpu.memory_space<vmem>>, vector<8x32xf32>
    %cst_54 = arith.constant dense<0.000000e+00> : vector<16x32xf32>
    %95 = tpu.matmul %93, %94, %cst_54 {dimension_numbers = #tpu.dot_dimension_numbers<[1], [0], [0], [1], [0, 0, 1, 1], [], []>} : vector<16x8xf32>, vector<8x32xf32>, vector<16x32xf32> -> vector<16x32xf32>
    %96 = arith.addf %76, %95 : vector<16x32xf32>
    %97 = vector.shape_cast %96 : vector<16x32xf32> to vector<2x8x32xf32>
    %98 = tpu.transpose %97, [1, 0, 2] : vector<2x8x32xf32> -> vector<8x2x32xf32>
    %99 = vector.shape_cast %98 : vector<8x2x32xf32> to vector<16x32xf32>
    %100 = arith.addf %99, %2 : vector<16x32xf32>
    %cst_55 = arith.constant dense<0.000000e+00> : vector<16xf32>
    %101 = vector.multi_reduction <add>, %100, %cst_55 [1] : vector<16x32xf32> to vector<16xf32>
    %102 = vector.shape_cast %101 : vector<16xf32> to vector<16x1xf32>
    %cst_56 = arith.constant 3.200000e+01 : f32
    %103 = vector.broadcast %cst_56 : f32 to vector<16x1xf32>
    %104 = arith.divf %102, %103 : vector<16x1xf32>
    %105 = vector.broadcast %104 : vector<16x1xf32> to vector<16x32xf32>
    %106 = arith.subf %100, %105 : vector<16x32xf32>
    %107 = arith.mulf %106, %106 : vector<16x32xf32>
    %cst_57 = arith.constant dense<0.000000e+00> : vector<16xf32>
    %108 = vector.multi_reduction <add>, %107, %cst_57 [1] : vector<16x32xf32> to vector<16xf32>
    %109 = vector.shape_cast %108 : vector<16xf32> to vector<16x1xf32>
    %cst_58 = arith.constant 3.200000e+01 : f32
    %110 = vector.broadcast %cst_58 : f32 to vector<16x1xf32>
    %111 = arith.divf %109, %110 : vector<16x1xf32>
    %112 = vector.broadcast %104 : vector<16x1xf32> to vector<16x32xf32>
    %113 = arith.subf %100, %112 : vector<16x32xf32>
    %cst_59 = arith.constant 9.99999974E-6 : f32
    %114 = vector.broadcast %cst_59 : f32 to vector<16x1xf32>
    %115 = arith.addf %111, %114 : vector<16x1xf32>
    %116 = math.rsqrt %115 : vector<16x1xf32>
    %117 = vector.broadcast %116 : vector<16x1xf32> to vector<16x32xf32>
    %118 = arith.mulf %113, %117 : vector<16x32xf32>
    %c0_60 = arith.constant 0 : index
    %c0_61 = arith.constant 0 : index
    %119 = vector.load %arg8[%c0_60, %c0_61] : memref<16x32xf32, #tpu.memory_space<vmem>>, vector<16x32xf32>
    tpu.vector_store %arg8[%c0_60, %c0_61], %118 {strides = array<i32>} : memref<16x32xf32, #tpu.memory_space<vmem>>, vector<16x32xf32>,
    return
  }
}

</mosaic_0001>

<bundles_post_ra>
// kernel: tpu_custom_call.1
= control target key start
LH: loop header
LB: loop body
LE: loop exit
PB: predicated region body
PF: predicated region fallthrough
CT: control target
= control target key end

     0   :  { %15 = vsyncpa [#allocation3], 0  ;;  %s3496_s0 = inlined_call_operand.hbm [shape: f32[16,16], index: 0, kind: input, shape index: {}]   ;;  %s3497_s1 = inlined_call_operand.hbm [shape: f32[16,32], index: 1, kind: input, shape index: {}]   ;;  %s3498_s2 = inlined_call_operand.hbm [shape: f32[16,32], index: 2, kind: input, shape index: {}]   ;;  %s3499_s3 = inlined_call_operand.hbm [shape: f32[16,32], index: 3, kind: input, shape index: {}]   ;;  %s3500_s4 = inlined_call_operand.hbm [shape: f32[32,32], index: 4, kind: input, shape index: {}]   ;;  %s3501_s5 = inlined_call_operand.hbm [shape: f32[32,32], index: 5, kind: input, shape index: {}]   ;;  %s3502_s6 = inlined_call_operand.hbm [shape: f32[32,32], index: 6, kind: input, shape index: {}]   ;;  %s3503_s7 = inlined_call_operand.hbm [shape: f32[32,32], index: 7, kind: input, shape index: {}]   ;;  %s3504_s8 = inlined_call_operand.hbm [shape: f32[16,32], index: 8, kind: output, shape index: {0}]   ;;  %s3505_s9 = inlined_call_operand.vmem [shape: f32[2,32,8], index: 9, kind: output, shape index: {1}]  }
   0x1   :  { %16 = vsyncpa [#allocation6], 0 }
   0x2   :  { %17 = vsyncpa [#allocation9], 0 }
   0x3   :  { %18 = vsyncpa [#allocation12], 0 }
   0x4   :  { %19 = vsyncpa [#allocation15], 0 }
   0x5   :  { %20 = vsyncpa [#allocation4], 0  ;;  %s3090_s30 = smov [#allocation5]   ;;  %s3091_s11 = smov [#allocation8]  }
   0x6   :  { %s38_s10 = sshll.u32 %s3090_s30, 4  ;;  %s62_s12 = sshll.u32 %s3091_s11, 4  ;;  %s39_s10 = int_to_ptr.vmem [resolvable:$true] %s38_s10  ;;  %s63_s12 = int_to_ptr.vmem [resolvable:$true] %s62_s12 }
   0x7   :  { %s2906_s13 = scalar_lea.vmem %s39_s10, 256  ;;  %p2911_p1 = scmp.lt.s32.totalorder %s39_s10, %s39_s10 }
   0x8   :  { %p2907_p0 = scmp.ne.s32.totalorder %s39_s10, %s2906_s13  ;;  %p2912_p2 = scmp.lt.s32.totalorder %s2906_s13, %s2906_s13 }
   0xa   :  { %p2913_p3 = por %p2912_p2, %p2911_p1 }
   0xc   :  { %p2914_p4 = pnand %p2913_p3, %p2907_p0 }
   0xe   :  { %2917 = shalt.err (!%p2914_p4)
}
   0xf   :  { %s3092_s14 = smov 128   ;;  %s3093_s15 = smov 8  }
  0x10   :  { %44 = dma.hbm_to_vmem [thread:$0]  %s3497_s1, 256, %s39_s10, [#allocation6], %s3092_s14, %s3092_s14, %s3093_s15  }
  0x11   :  { %s2926_s18 = scalar_lea.vmem %s63_s12, 256  ;;  %p2931_p6 = scmp.lt.s32.totalorder %s63_s12, %s63_s12 }
  0x12   :  { %p2927_p5 = scmp.ne.s32.totalorder %s63_s12, %s2926_s18  ;;  %p2932_p7 = scmp.lt.s32.totalorder %s2926_s18, %s2926_s18 }
  0x14   :  { %p2933_p8 = por %p2932_p7, %p2931_p6 }
  0x16   :  { %p2934_p9 = pnand %p2933_p8, %p2927_p5 }
  0x18   :  { %2937 = shalt.err (!%p2934_p9)
}
  0x19   :  { %68 = dma.hbm_to_vmem [thread:$0]  %s3499_s3, 256, %s63_s12, [#allocation9], %s3092_s14, %s3092_s14, %s3093_s15  }
  0x1a   :  { %s3094_s21 = smov [#allocation11]   ;;  %s3095_s23 = smov [#allocation2]  }
  0x1b   :  { %s86_s22 = sshll.u32 %s3094_s21, 4  ;;  %s26_s24 = sshll.u32 %s3095_s23, 4  ;;  %s87_s22 = int_to_ptr.vmem [resolvable:$true] %s86_s22  ;;  %s27_s24 = int_to_ptr.vmem [resolvable:$true] %s26_s24 }
  0x1c   :  { %s2946_s1 = scalar_lea.vmem %s87_s22, 512  ;;  %p2951_p11 = scmp.lt.s32.totalorder %s87_s22, %s87_s22 }
  0x1d   :  { %p2947_p10 = scmp.ne.s32.totalorder %s87_s22, %s2946_s1  ;;  %p2952_p12 = scmp.lt.s32.totalorder %s2946_s1, %s2946_s1 }
  0x1f   :  { %p2953_p13 = por %p2952_p12, %p2951_p11 }
  0x21   :  { %p2954_p0 = pnand %p2953_p13, %p2947_p10 }
  0x23   :  { %2957 = shalt.err (!%p2954_p0)
}
  0x24   :  { %92 = dma.hbm_to_vmem [thread:$0]  %s3501_s5, 512, %s87_s22, [#allocation12], %s3092_s14, %s3092_s14, %s3093_s15  }
  0x25   :  { %s2966_s3 = scalar_lea.vmem %s27_s24, 256  ;;  %p2971_p2 = scmp.lt.s32.totalorder %s27_s24, %s27_s24 }
  0x26   :  { %p2967_p1 = scmp.ne.s32.totalorder %s27_s24, %s2966_s3  ;;  %p2972_p3 = scmp.lt.s32.totalorder %s2966_s3, %s2966_s3 }
  0x28   :  { %p2973_p4 = por %p2972_p3, %p2971_p2 }
  0x2a   :  { %p2974_p5 = pnand %p2973_p4, %p2967_p1 }
  0x2c   :  { %2977 = shalt.err (!%p2974_p5)
}
  0x2d   :  { %32 = dma.hbm_to_vmem [thread:$0]  %s3496_s0, 256, %s27_s24, [#allocation3], %s3092_s14, %s3092_s14, %s3093_s15  }
  0x2e   :  { %s3096_s29 = smov [#allocation7]   ;;  %s3097_s10 = smov [#allocation10]  }
  0x2f   :  { %s50_s30 = sshll.u32 %s3096_s29, 4  ;;  %s74_s11 = sshll.u32 %s3097_s10, 4  ;;  %s51_s30 = int_to_ptr.vmem [resolvable:$true] %s50_s30  ;;  %s75_s11 = int_to_ptr.vmem [resolvable:$true] %s74_s11 }
  0x30   :  { %s2986_s5 = scalar_lea.vmem %s51_s30, 256  ;;  %p2991_p7 = scmp.lt.s32.totalorder %s51_s30, %s51_s30 }
  0x31   :  { %p2987_p6 = scmp.ne.s32.totalorder %s51_s30, %s2986_s5  ;;  %p2992_p8 = scmp.lt.s32.totalorder %s2986_s5, %s2986_s5 }
  0x33   :  { %p2993_p9 = por %p2992_p8, %p2991_p7 }
  0x35   :  { %p2994_p10 = pnand %p2993_p9, %p2987_p6 }
  0x37   :  { %2997 = shalt.err (!%p2994_p10)
}
  0x38   :  { %56 = dma.hbm_to_vmem [thread:$0]  %s3498_s2, 256, %s51_s30, [#allocation6], %s3092_s14, %s3092_s14, %s3093_s15  }
  0x39   :  { %s3006_s0 = scalar_lea.vmem %s75_s11, 512  ;;  %p3011_p12 = scmp.lt.s32.totalorder %s75_s11, %s75_s11 }
  0x3a   :  { %p3007_p11 = scmp.ne.s32.totalorder %s75_s11, %s3006_s0  ;;  %p3012_p13 = scmp.lt.s32.totalorder %s3006_s0, %s3006_s0 }
  0x3c   :  { %p3013_p0 = por %p3012_p13, %p3011_p12 }
  0x3e   :  { %p3014_p1 = pnand %p3013_p0, %p3007_p11 }
  0x40   :  { %3017 = shalt.err (!%p3014_p1)
}
  0x41   :  { %80 = dma.hbm_to_vmem [thread:$0]  %s3500_s4, 512, %s75_s11, [#allocation9], %s3092_s14, %s3092_s14, %s3093_s15  }
  0x42   :  { %s3098_s18 = smov [#allocation13]   ;;  %s3099_s20 = smov [#allocation14]  }
  0x43   :  { %s98_s19 = sshll.u32 %s3098_s18, 4  ;;  %s110_s21 = sshll.u32 %s3099_s20, 4  ;;  %s99_s19 = int_to_ptr.vmem [resolvable:$true] %s98_s19  ;;  %s111_s21 = int_to_ptr.vmem [resolvable:$true] %s110_s21 }
  0x44   :  { %s3026_s2 = scalar_lea.vmem %s99_s19, 512  ;;  %p3031_p3 = scmp.lt.s32.totalorder %s99_s19, %s99_s19 }
  0x45   :  { %p3027_p2 = scmp.ne.s32.totalorder %s99_s19, %s3026_s2  ;;  %p3032_p4 = scmp.lt.s32.totalorder %s3026_s2, %s3026_s2 }
  0x47   :  { %p3033_p5 = por %p3032_p4, %p3031_p3 }
  0x49   :  { %p3034_p6 = pnand %p3033_p5, %p3027_p2 }
  0x4b   :  { %3037 = shalt.err (!%p3034_p6)
}
  0x4c   :  { %104 = dma.hbm_to_vmem [thread:$0]  %s3502_s6, 512, %s99_s19, [#allocation12], %s3092_s14, %s3092_s14, %s3093_s15  }
  0x4d   :  { %s3046_s4 = scalar_lea.vmem %s111_s21, 512  ;;  %p3051_p8 = scmp.lt.s32.totalorder %s111_s21, %s111_s21 }
  0x4e   :  { %p3047_p7 = scmp.ne.s32.totalorder %s111_s21, %s3046_s4  ;;  %p3052_p9 = scmp.lt.s32.totalorder %s3046_s4, %s3046_s4 }
  0x50   :  { %p3053_p10 = por %p3052_p9, %p3051_p8 }
  0x52   :  { %p3054_p11 = pnand %p3053_p10, %p3047_p7 }
  0x54   :  { %3057 = shalt.err (!%p3054_p11)
}
  0x55   :  { %116 = dma.hbm_to_vmem [thread:$0]  %s3503_s7, 512, %s111_s21, [#allocation15], %s3092_s14, %s3092_s14, %s3093_s15  }
  0x56   :  { %3078 = dma.done.wait [#allocation3], 256  }
  0x57   :  { %3079 = vsyncadd [#allocation3], 4294967040 }
  0x58   :  { %3080 = dma.done.wait [#allocation6], 512  }
  0x59   :  { %3081 = vsyncadd [#allocation6], 4294966784 }
  0x5a   :  { %3082 = dma.done.wait [#allocation9], 768  }
  0x5b   :  { %3083 = vsyncadd [#allocation9], 4294966528 }
  0x5c   :  { %3084 = dma.done.wait [#allocation12], 1024  }
  0x5d   :  { %3085 = vsyncadd [#allocation12], 4294966272 }
  0x5e   :  { %3086 = dma.done.wait [#allocation15], 512  }
  0x5f   :  { %3087 = vsyncadd [#allocation15], 4294966784  ;;  %vm145_vm0 = vcmask 130048   ;;  %v144_v0 = vld [vmem:[#allocation8 + $0x8] sm:$0xff]  ;;  %v143_v1 = vld [vmem:[#allocation8] sm:$0xff]  ;;  %vm231_vm1 = vcmask 261120  }
  0x60   :  { %v141_v2 = vld [vmem:[#allocation2] sm:$0xff]  ;;  %2700 = vmatprep.subr.mxu0 %v144_v0  ;;  %v142_v3 = vld [vmem:[#allocation2 + $0x8] sm:$0xff]  ;;  %v320_v4 = vld [vmem:[#allocation11 + $0x18] sm:$0xff]  ;;  %v3100_v14 = vmov 0.0   ;;  %vm489_vm2 = vcmask 64512   ;;  %s3101_s6 = smov 120  }
  0x61   :  { %2704 = vmatprep.mubr.msk.f32.mxu0 %vm145_vm0, %v141_v2  ;;  %2701 = vmatpush3.msra.mxu0 %v144_v0  ;;  %v230_v5 = vld [vmem:[#allocation10 + $0x18] sm:$0xff]  ;;  %v229_v6 = vld [vmem:[#allocation10 + $0x10] sm:$0xff]  ;;  %v318_v9 = vld [vmem:[#allocation11 + $0x8] sm:$0xff]  ;;  %vm3102_vm3 = vmmov 0   ;;  %s3103_s27 = smov 112   ;;  %s3104_s11 = smov 104  }
  0x62   :  { %2702 = vmatprep.subr.mxu0 %v143_v1  ;;  %2707 = vmatprep.subr.mxu1 %v230_v5  ;;  %v319_v7 = vld [vmem:[#allocation11 + $0x10] sm:$0xff]  ;;  %v317_v10 = vld [vmem:[#allocation11] sm:$0xff]  ;;  %v228_v11 = vld [vmem:[#allocation10 + $0x8] sm:$0xff] }
  0x63   :  { %2703 = vmatpush3.msra.mxu0 %v143_v1  ;;  %2708 = vmatpush3.msra.mxu1 %v230_v5  ;;  %v315_v8 = vld [vmem:[#allocation5] sm:$0xff]  ;;  %v316_v12 = vld [vmem:[#allocation5 + $0x8] sm:$0xff]  ;;  %v227_v13 = vld [vmem:[#allocation10] sm:$0xff] }
  0x64   :  { %2705 = vmatmul.mubr.msk.f32.vlgmr.msra.gmra.mxu0 %vm145_vm0, %v142_v3  ;;  %2718 = vmatprep.subr.mxu0 %v320_v4  ;;  %v407_v23 = vld [vmem:[#allocation13 + $0x18] sm:$0xff]  ;;  %v406_v24 = vld [vmem:[#allocation13 + $0x10] sm:$0xff]  ;;  %v402_v25 = vld [vmem:[#allocation7] sm:$0xff] }
  0x65   :  { %2719 = vmatpush3.msra.mxu0 %v320_v4  ;;  %2709 = vmatprep.subr.mxu1 %v229_v6  ;;  %v405_v26 = vld [vmem:[#allocation13 + $0x8] sm:$0xff]  ;;  %v404_v27 = vld [vmem:[#allocation13] sm:$0xff] }
  0x66   :  { %2720 = vmatprep.subr.mxu0 %v319_v7  ;;  %2710 = vmatpush3.msra.mxu1 %v229_v6  ;;  %v403_v28 = vld [vmem:[#allocation7 + $0x8] sm:$0xff] }
  0x67   :  { %2721 = vmatpush3.msra.mxu0 %v319_v7  ;;  %2726 = vmatprep.mubr.msk.f32.mxu0 %vm231_vm1, %v315_v8 }
  0x68   :  { %2722 = vmatprep.subr.mxu0 %v318_v9  ;;  %2711 = vmatprep.subr.mxu1 %v228_v11 }
  0x69   :  { %2723 = vmatpush3.msra.mxu0 %v318_v9  ;;  %2712 = vmatpush3.msra.mxu1 %v228_v11 }
  0x6a   :  { %2724 = vmatprep.subr.mxu0 %v317_v10  ;;  %2713 = vmatprep.subr.mxu1 %v227_v13 }
  0x6b   :  { %2725 = vmatpush3.msra.mxu0 %v317_v10  ;;  %2714 = vmatpush3.msra.mxu1 %v227_v13 }
  0x6c   :  { %2727 = vmatmul.mubr.msk.f32.vlgmr.msra.gmra.mxu0 %vm231_vm1, %v316_v12  ;;  %2740 = vmatprep.subr.mxu0 %v3100_v14 }
  0x6d   :  { %2742 = vmatprep.mubr.msk.f32.mxu0 %vm3102_vm3, %v3100_v14  ;;  %2729 = vmatprep.subr.mxu1 %v407_v23 }
 0x124   :  { %v3215_v15 = vpop.f32.mrf.mxu0 }
 0x126   :  { %v3217_v16 = vpop.f32.mrf.mxu0 }
 0x127   :  { %2715 = vmatprep.mubr.msk.f32.mxu1 %vm231_vm1, %v3217_v16 }
 0x128   :  { %2716 = vmatmul.mubr.msk.f32.vlgmr.msra.gmra.mxu1 %vm231_vm1, %v3215_v15 }
 0x129   :  { %2730 = vmatpush3.msra.mxu1 %v407_v23  ;;  %2737 = vmatprep.mubr.msk.f32.mxu1 %vm231_vm1, %v402_v25 }
 0x12a   :  { %2731 = vmatprep.subr.mxu1 %v406_v24 }
 0x12b   :  { %2732 = vmatpush3.msra.mxu1 %v406_v24 }
 0x12c   :  { %v3223_v17 = vpop.f32.mrf.mxu0  ;;  %2733 = vmatprep.subr.mxu1 %v405_v26 }
 0x12d   :  { %893 = vrot.lane.b32.xlu1 %v3223_v17, %s3101_s6  ;;  %2734 = vmatpush3.msra.mxu1 %v405_v26 }
 0x12e   :  { %v3227_v18 = vpop.f32.mrf.mxu0  ;;  %2735 = vmatprep.subr.mxu1 %v404_v27 }
 0x12f   :  { %2741 = vmatpush3.xpose.msk.msra.mxu0 %vm489_vm2, %v3227_v18  ;;  %2736 = vmatpush3.msra.mxu1 %v404_v27 }
 0x130   :  { %2745 = vmatprep.subr.mxu0 %v3100_v14  ;;  %2738 = vmatmul.mubr.msk.f32.vlgmr.msra.gmra.mxu1 %vm231_vm1, %v403_v28 }
 0x131   :  { %2750 = vmatprep.subr.mxu1 %v3100_v14  ;;  %2752 = vmatprep.mubr.msk.f32.mxu1 %vm3102_vm3, %v3100_v14 }
 0x19f   :  { %v894_v47 = vpop.permute.xlu1 %893 }
 0x1e8   :  { %v2717_v19 = vpop.f32.mrf.mxu1 }
 0x1e9   :  { %v3244_v22 = vmul.f32 0.35355338, %v2717_v19  ;;  %v812_v19 = vld [vmem:[#allocation14] sm:$0xff] }
 0x1ea   :  { %v304_v20 = vpop.f32.mrf.mxu1 }
 0x1eb   :  { %v3234_v21 = vmul.f32 0.35355338, %v304_v20 }
 0x1ed   :  { %813 = vrot.lane.b32.xlu1 %v3234_v21, %s3101_s6  ;;  %2743 = vmatmul.mubr.msk.f32.vlgmr.msra.gmra.mxu0 %vm489_vm2, %v3234_v21 }
 0x1ee   :  { %2746 = vmatpush3.xpose.msk.msra.mxu0 %vm489_vm2, %v3223_v17  ;;  %2747 = vmatprep.mubr.msk.f32.mxu0 %vm3102_vm3, %v3100_v14 }
 0x1ef   :  { %2755 = vmatprep.subr.mxu0 %v3100_v14 }
 0x1f0   :  { %v3262_v45 = vpop.f32.mrf.mxu1 }
 0x1f1   :  { %2748 = vmatmul.mubr.msk.f32.vlgmr.msra.gmra.mxu0 %vm489_vm2, %v3244_v22 }
 0x1f2   :  { %2757 = vmatprep.mubr.msk.f32.mxu0 %vm3102_vm3, %v3100_v14  ;;  %2756 = vmatpush3.msra.mxu0 %v3262_v45  ;;  %v3266_v46 = vpop.f32.mrf.mxu1 }
 0x1f3   :  { %2765 = vmatprep.subr.mxu0 %v3100_v14  ;;  %2751 = vmatpush3.msra.mxu1 %v3266_v46 }
 0x1f4   :  { %2760 = vmatprep.subr.mxu1 %v3100_v14 }
 0x25f   :  { %v814_v48 = vpop.permute.xlu1 %813 }
 0x2ad   :  { %v562_v29 = vpop.f32.mrf.mxu0 }
 0x2ae   :  { %v642_v30 = vsel %vm489_vm2, %v562_v29, -inf }
 0x2af   :  { %643 = vmax.xlane.f32.xlu0 %v642_v30  ;;  %v2744_v31 = vpop.f32.mrf.mxu0 }
 0x2b1   :  { %v638_v32 = vpop.f32.mrf.mxu0 }
 0x2b2   :  { %v645_v33 = vsel %vm489_vm2, %v638_v32, -inf }
 0x2b3   :  { %646 = vmax.xlane.f32.xlu0 %v645_v33  ;;  %v2749_v34 = vpop.f32.mrf.mxu0 }
 0x2c9   :  { %815 = vrot.lane.b32.xlu0 %v3227_v18, %s3101_s6 }
 0x338   :  { %v644_v35 = vpop.xlane.xlu0 %643 }
 0x339   :  { %v648_v36 = vsub.f32 %v562_v29, %v644_v35 }
 0x33b   :  { %v650_v37 = vmul.f32 1.442695, %v648_v36 }
 0x33c   :  { %v647_v38 = vpop.xlane.xlu0 %646 }
 0x33d   :  { %2862 = vpow2.f32 %v650_v37  ;;  %v649_v39 = vsub.f32 %v638_v32, %v647_v38  ;;  %v1147_v32 = vld [vmem:[#allocation14 + $0x8] sm:$0xff] }
 0x33f   :  { %v652_v40 = vmul.f32 1.442695, %v649_v39 }
 0x340   :  { %v816_v53 = vpop.permute.xlu0 %815 }
 0x341   :  { %2864 = vpow2.f32 %v652_v40 }
 0x34a   :  { %v2863_v41 = vpop.eup %2862 }
 0x34b   :  { %v654_v42 = vsel %vm489_vm2, %v2863_v41, 0.0 }
 0x34c   :  { %655 = vadd.xlane.f32.xlu1 %v654_v42 }
 0x34e   :  { %v2865_v43 = vpop.eup %2864 }
 0x34f   :  { %v657_v44 = vsel %vm489_vm2, %v2865_v43, 0.0 }
 0x350   :  { %658 = vadd.xlane.f32.xlu1 %v657_v44 }
 0x361   :  { %891 = vrot.lane.b32.xlu1 %v3244_v22, %s3101_s6 }
 0x3d5   :  { %v656_v49 = vpop.xlane.xlu1 %655 }
 0x3d6   :  { %2866 = vrcp.f32 %v656_v49 }
 0x3d9   :  { %v659_v50 = vpop.xlane.xlu1 %658 }
 0x3da   :  { %2868 = vrcp.f32 %v659_v50 }
 0x3dd   :  { %v892_v56 = vpop.permute.xlu1 %891 }
 0x3e3   :  { %v2867_v51 = vpop.eup %2866 }
 0x3e4   :  { %v662_v52 = vmul.f32 %v2867_v51, %v2863_v41 }
 0x3e6   :  { %664 = vst.msk [vmem:[%s3505_s9] sm:$0xff] %vm489_vm2, %v662_v52  ;;  %2753 = vmatmul.mubr.msk.f32.vlgmr.msra.gmra.mxu1 %vm489_vm2, %v662_v52 }
 0x3e7   :  { %v2869_v54 = vpop.eup %2868  ;;  %2761 = vmatpush3.xpose.msk.msra.mxu1 %vm489_vm2, %v816_v53  ;;  %2762 = vmatprep.mubr.msk.f32.mxu1 %vm3102_vm3, %v3100_v14 }
 0x3e8   :  { %v663_v55 = vmul.f32 %v2869_v54, %v2865_v43  ;;  %2770 = vmatprep.subr.mxu1 %v3100_v14 }
 0x3ea   :  { %665 = vst.msk [vmem:[%s3505_s9 + $0x20] sm:$0xff] %vm489_vm2, %v663_v55  ;;  %2758 = vmatmul.mubr.msk.f32.vlgmr.msra.gmra.mxu0 %vm489_vm2, %v663_v55  ;;  %2763 = vmatmul.mubr.msk.f32.vlgmr.msra.gmra.mxu1 %vm489_vm2, %v814_v48 }
 0x3eb   :  { %2766 = vmatpush3.xpose.msk.msra.mxu0 %vm489_vm2, %v894_v47  ;;  %2767 = vmatprep.mubr.msk.f32.mxu0 %vm3102_vm3, %v3100_v14 }
 0x3ec   :  { %2775 = vmatprep.subr.mxu0 %v3100_v14  ;;  %2772 = vmatprep.mubr.msk.f32.mxu1 %vm3102_vm3, %v3100_v14 }
 0x3ee   :  { %2768 = vmatmul.mubr.msk.f32.vlgmr.msra.gmra.mxu0 %vm489_vm2, %v892_v56 }
 0x3ef   :  { %2777 = vmatprep.mubr.msk.f32.mxu0 %vm3102_vm3, %v3100_v14 }
 0x4a6   :  { %v735_v57 = vpop.f32.mrf.mxu1 }
 0x4a8   :  { %v2754_v58 = vpop.f32.mrf.mxu1 }
 0x4aa   :  { %v808_v59 = vpop.f32.mrf.mxu0  ;;  %v887_v60 = vpop.f32.mrf.mxu1 }
 0x4ab   :  { %v969_v61 = vsel %vm489_vm2, %v887_v60, -inf }
 0x4ac   :  { %970 = vmax.xlane.f32.xlu0 %v969_v61  ;;  %v2759_v62 = vpop.f32.mrf.mxu0  ;;  %v2764_v63 = vpop.f32.mrf.mxu1 }
 0x4ae   :  { %v965_v0 = vpop.f32.mrf.mxu0 }
 0x4af   :  { %v972_v1 = vsel %vm489_vm2, %v965_v0, -inf }
 0x4b0   :  { %973 = vmax.xlane.f32.xlu1 %v972_v1  ;;  %v2769_v2 = vpop.f32.mrf.mxu0 }
 0x4c1   :  { %1071 = vrot.lane.b32.xlu1 %v3262_v45, %s3101_s6 }
 0x4c5   :  { %1312 = vrot.lane.b32.xlu1 %v3227_v18, %s3103_s27 }
 0x4c9   :  { %1390 = vrot.lane.b32.xlu1 %v3223_v17, %s3103_s27 }
 0x4cd   :  { %1388 = vrot.lane.b32.xlu1 %v3244_v22, %s3103_s27 }
 0x535   :  { %v971_v3 = vpop.xlane.xlu0 %970 }
 0x536   :  { %v975_v4 = vsub.f32 %v887_v60, %v971_v3 }
 0x538   :  { %v977_v5 = vmul.f32 1.442695, %v975_v4  ;;  %v1642_v4 = vld [vmem:[#allocation14 + $0x10] sm:$0xff] }
 0x539   :  { %v974_v6 = vpop.xlane.xlu1 %973 }
 0x53a   :  { %2870 = vpow2.f32 %v977_v5  ;;  %v976_v7 = vsub.f32 %v965_v0, %v974_v6 }
 0x53c   :  { %v979_v8 = vmul.f32 1.442695, %v976_v7 }
 0x53d   :  { %v1072_v9 = vpop.permute.xlu1 %1071 }
 0x53e   :  { %2872 = vpow2.f32 %v979_v8  ;;  %2776 = vmatpush3.msra.mxu0 %v1072_v9 }
 0x53f   :  { %2785 = vmatprep.subr.mxu0 %v812_v19 }
 0x541   :  { %v1313_v27 = vpop.permute.xlu1 %1312 }
 0x545   :  { %v1391_v30 = vpop.permute.xlu1 %1390 }
 0x547   :  { %v2871_v10 = vpop.eup %2870 }
 0x548   :  { %v981_v11 = vsel %vm489_vm2, %v2871_v10, 0.0 }
 0x549   :  { %982 = vadd.xlane.f32.xlu0 %v981_v11  ;;  %v1389_v31 = vpop.permute.xlu1 %1388 }
 0x54b   :  { %v2873_v12 = vpop.eup %2872 }
 0x54c   :  { %v984_v13 = vsel %vm489_vm2, %v2873_v12, 0.0 }
 0x54d   :  { %985 = vadd.xlane.f32.xlu0 %v984_v13 }
 0x563   :  { %994 = vrot.lane.b32.xlu0 %v3266_v46, %s3101_s6 }
 0x567   :  { %1310 = vrot.lane.b32.xlu0 %v3234_v21, %s3103_s27 }
 0x5d2   :  { %v983_v20 = vpop.xlane.xlu0 %982 }
 0x5d3   :  { %2874 = vrcp.f32 %v983_v20 }
 0x5d6   :  { %v986_v23 = vpop.xlane.xlu0 %985 }
 0x5d7   :  { %2876 = vrcp.f32 %v986_v23 }
 0x5da   :  { %v995_v24 = vpop.permute.xlu0 %994 }
 0x5db   :  { %2771 = vmatpush3.msra.mxu1 %v995_v24 }
 0x5dc   :  { %2780 = vmatprep.subr.mxu1 %v1147_v32 }
 0x5de   :  { %v1311_v37 = vpop.permute.xlu0 %1310 }
 0x5e0   :  { %v2875_v25 = vpop.eup %2874 }
 0x5e1   :  { %v989_v26 = vmul.f32 %v2875_v25, %v2871_v10 }
 0x5e3   :  { %991 = vst.msk [vmem:[%s3505_s9 + $0x8] sm:$0xff] %vm489_vm2, %v989_v26  ;;  %2773 = vmatmul.mubr.msk.f32.vlgmr.msra.gmra.mxu1 %vm489_vm2, %v989_v26 }
 0x5e4   :  { %v2877_v28 = vpop.eup %2876  ;;  %2781 = vmatpush3.msra.mxu1 %v1147_v32 }
 0x5e5   :  { %v990_v29 = vmul.f32 %v2877_v28, %v2873_v12  ;;  %2790 = vmatprep.subr.mxu1 %v3100_v14 }
 0x5e7   :  { %992 = vst.msk [vmem:[%s3505_s9 + $0x28] sm:$0xff] %vm489_vm2, %v990_v29  ;;  %2778 = vmatmul.mubr.msk.f32.vlgmr.msra.gmra.mxu0 %vm489_vm2, %v990_v29 }
 0x5e8   :  { %2787 = vmatprep.mubr.msk.f32.mxu0 %vm489_vm2, %v735_v57  ;;  %2786 = vmatpush3.msra.mxu0 %v812_v19 }
 0x5e9   :  { %2795 = vmatprep.subr.mxu0 %v3100_v14 }
 0x5eb   :  { %2788 = vmatmul.mubr.msk.f32.vlgmr.msra.gmra.mxu0 %vm489_vm2, %v808_v59 }
 0x5ec   :  { %2796 = vmatpush3.xpose.msk.msra.mxu0 %vm489_vm2, %v1391_v30  ;;  %2797 = vmatprep.mubr.msk.f32.mxu0 %vm3102_vm3, %v3100_v14 }
 0x5ed   :  { %2805 = vmatprep.subr.mxu0 %v3100_v14 }
 0x5ef   :  { %2798 = vmatmul.mubr.msk.f32.vlgmr.msra.gmra.mxu0 %vm489_vm2, %v1389_v31 }
 0x5f0   :  { %2807 = vmatprep.mubr.msk.f32.mxu0 %vm3102_vm3, %v3100_v14 }
 0x6a3   :  { %v1066_v33 = vpop.f32.mrf.mxu1 }
 0x6a4   :  { %2782 = vmatprep.mubr.msk.f32.mxu1 %vm489_vm2, %v1066_v33 }
 0x6a5   :  { %v2774_v34 = vpop.f32.mrf.mxu1 }
 0x6a7   :  { %v1143_v35 = vpop.f32.mrf.mxu0 }
 0x6a8   :  { %2783 = vmatmul.mubr.msk.f32.vlgmr.msra.gmra.mxu1 %vm489_vm2, %v1143_v35 }
 0x6a9   :  { %2791 = vmatpush3.xpose.msk.msra.mxu1 %vm489_vm2, %v1313_v27  ;;  %v2779_v36 = vpop.f32.mrf.mxu0  ;;  %2792 = vmatprep.mubr.msk.f32.mxu1 %vm3102_vm3, %v3100_v14 }
 0x6aa   :  { %2800 = vmatprep.subr.mxu1 %v3100_v14 }
 0x6ab   :  { %v3339_v38 = vpop.f32.mrf.mxu0 }
 0x6ac   :  { %2793 = vmatmul.mubr.msk.f32.vlgmr.msra.gmra.mxu1 %vm489_vm2, %v1311_v37 }
 0x6ad   :  { %v3342_v39 = vpop.f32.mrf.mxu0  ;;  %2802 = vmatprep.mubr.msk.f32.mxu1 %vm3102_vm3, %v3100_v14 }
 0x6af   :  { %v1462_v40 = vpop.f32.mrf.mxu0 }
 0x6b0   :  { %v1469_v41 = vsel %vm489_vm2, %v1462_v40, -inf }
 0x6b1   :  { %1470 = vmax.xlane.f32.xlu1 %v1469_v41  ;;  %v2799_v42 = vpop.f32.mrf.mxu0 }
 0x6c2   :  { %1566 = vrot.lane.b32.xlu1 %v3262_v45, %s3103_s27 }
 0x6c6   :  { %1728 = vrot.lane.b32.xlu1 %v3227_v18, %s3104_s11 }
 0x6ca   :  { %1806 = vrot.lane.b32.xlu1 %v3223_v17, %s3104_s11 }
 0x6ce   :  { %1804 = vrot.lane.b32.xlu1 %v3244_v22, %s3104_s11 }
 0x73a   :  { %v1471_v43 = vpop.xlane.xlu1 %1470 }
 0x73b   :  { %v1473_v47 = vsub.f32 %v1462_v40, %v1471_v43 }
 0x73d   :  { %v1476_v48 = vmul.f32 1.442695, %v1473_v47  ;;  %v2058_v47 = vld [vmem:[#allocation14 + $0x18] sm:$0xff] }
 0x73e   :  { %v1567_v44 = vpop.permute.xlu1 %1566 }
 0x73f   :  { %2806 = vmatpush3.msra.mxu0 %v1567_v44  ;;  %2878 = vpow2.f32 %v1476_v48 }
 0x740   :  { %2815 = vmatprep.subr.mxu0 %v3100_v14 }
 0x742   :  { %v1729_v61 = vpop.permute.xlu1 %1728 }
 0x746   :  { %v1807_v8 = vpop.permute.xlu1 %1806 }
 0x74a   :  { %v1805_v11 = vpop.permute.xlu1 %1804 }
 0x74c   :  { %v2879_v52 = vpop.eup %2878 }
 0x74d   :  { %v1481_v22 = vsel %vm489_vm2, %v2879_v52, 0.0 }
 0x768   :  { %v3356_v49 = vpop.f32.mrf.mxu1 }
 0x769   :  { %v1307_v24 = vadd.f32 %v3339_v38, %v3356_v49 }
 0x76a   :  { %v3358_v50 = vpop.f32.mrf.mxu1 }
 0x76b   :  { %v1302_v26 = vadd.f32 %v3342_v39, %v3358_v50 }
 0x76c   :  { %v1384_v51 = vpop.f32.mrf.mxu1 }
 0x76d   :  { %v1466_v18 = vsel %vm489_vm2, %v1384_v51, -inf }
 0x76e   :  { %1467 = vmax.xlane.f32.xlu0 %v1466_v18  ;;  %v2794_v17 = vpop.f32.mrf.mxu1 }
 0x76f   :  { %v3106_v17 = vmov 1934713408  }
 0x772   :  { %1482 = vadd.xlane.f32.xlu0 %v1481_v22  ;;  %v2175_v22 = vunpack.c.l.s4 %v3106_v17 }
 0x7f7   :  { %v1468_v53 = vpop.xlane.xlu0 %1467 }
 0x7f8   :  { %v1472_v54 = vsub.f32 %v1384_v51, %v1468_v53  ;;  %v3105_v51 = vmov 1983009808  }
 0x7f9   :  { %v2144_v18 = vunpack.c.l.s4 %v3105_v51  ;;  %v3108_v51 = vmov 842150450  }
 0x7fa   :  { %v1474_v55 = vmul.f32 1.442695, %v1472_v54 }
 0x7fb   :  { %v1483_v56 = vpop.xlane.xlu0 %1482  ;;  %v2145_v53 = vunpack.c.0.s8 %v2144_v18  ;;  %v2321_v18 = vunpack.c.l.s4 %v3108_v51 }
 0x7fc   :  { %2880 = vpow2.f32 %v1474_v55 }
 0x7fd   :  { %2882 = vrcp.f32 %v1483_v56 }
 0x809   :  { %v2881_v57 = vpop.eup %2880 }
 0x80a   :  { %v2883_v58 = vpop.eup %2882  ;;  %v1478_v59 = vsel %vm489_vm2, %v2881_v57, 0.0 }
 0x80b   :  { %1479 = vadd.xlane.f32.xlu0 %v1478_v59  ;;  %v1487_v60 = vmul.f32 %v2883_v58, %v2879_v52  ;;  %v2146_v52 = vlaneseq  ;;  %v2208_v58 = vcombine.high %v3217_v16, %v3217_v16 }
 0x80d   :  { %1489 = vst.msk [vmem:[%s3505_s9 + $0x30] sm:$0xff] %vm489_vm2, %v1487_v60  ;;  %2808 = vmatmul.mubr.msk.f32.vlgmr.msra.gmra.mxu0 %vm489_vm2, %v1487_v60  ;;  %v3418_v54 = vshrl.u32 %v2146_v52, 7  ;;  %v3109_v52 = vmov 1414812756  }
 0x80e   :  { %2816 = vmatpush3.xpose.msk.msra.mxu0 %vm489_vm2, %v1729_v61  ;;  %2817 = vmatprep.mubr.msk.f32.mxu0 %vm3102_vm3, %v3100_v14  ;;  %v2328_v17 = vunpack.c.l.s4 %v3109_v52 }
 0x80f   :  { %2825 = vmatprep.subr.mxu0 %v3100_v14  ;;  %v3423_v60 = vsub.s32 %v2145_v53, %v3418_v54 }
 0x821   :  { %1490 = vrot.lane.b32.xlu0 %v3266_v46, %s3103_s27 }
 0x825   :  { %1726 = vrot.lane.b32.xlu0 %v3234_v21, %s3104_s11 }
 0x894   :  { %v1480_v62 = vpop.xlane.xlu0 %1479 }
 0x895   :  { %2884 = vrcp.f32 %v1480_v62 }
 0x898   :  { %v1491_v63 = vpop.permute.xlu0 %1490 }
 0x899   :  { %2801 = vmatpush3.msra.mxu1 %v1491_v63  ;;  %v2225_v63 = vcombine.high %v3215_v15, %v3215_v15 }
 0x89a   :  { %2810 = vmatprep.subr.mxu1 %v1642_v4 }
 0x89c   :  { %v1727_v0 = vpop.permute.xlu0 %1726 }
 0x89d   :  { %2818 = vmatmul.mubr.msk.f32.vlgmr.msra.gmra.mxu0 %vm489_vm2, %v1727_v0 }
 0x89e   :  { %2827 = vmatprep.mubr.msk.f32.mxu0 %vm3102_vm3, %v3100_v14 }
 0x8a2   :  { %v2885_v1 = vpop.eup %2884 }
 0x8a3   :  { %v1486_v2 = vmul.f32 %v2885_v1, %v2881_v57  ;;  %v2176_v57 = vunpack.c.0.s8 %v2175_v22  ;;  %v3110_v22 = vmov 1987475062  }
 0x8a4   :  { %v2335_v53 = vunpack.c.l.s4 %v3110_v22 }
 0x8a5   :  { %1488 = vst.msk [vmem:[%s3505_s9 + $0x10] sm:$0xff] %vm489_vm2, %v1486_v2  ;;  %2803 = vmatmul.mubr.msk.f32.vlgmr.msra.gmra.mxu1 %vm489_vm2, %v1486_v2 }
 0x8a6   :  { %2811 = vmatpush3.msra.mxu1 %v1642_v4  ;;  %v2222_v4 = vrot.slane %v2208_v58, %v3423_v60  ;;  %v2336_v58 = vunpack.c.0.s8 %v2335_v53 }
 0x8a7   :  { %2820 = vmatprep.subr.mxu1 %v3100_v14 }
 0x8cd   :  { %v1638_v21 = vpop.f32.mrf.mxu0 }
 0x8cf   :  { %v2809_v3 = vpop.f32.mrf.mxu0 }
 0x8d0   :  { %v2215_v3 = vrot.slane %v3217_v16, %v3423_v60 }
 0x95d   :  { %v1800_v5 = vpop.f32.mrf.mxu0 }
 0x95e   :  { %v1882_v6 = vsel %vm489_vm2, %v1800_v5, -inf }
 0x95f   :  { %1883 = vmax.xlane.f32.xlu0 %v1882_v6  ;;  %v2819_v7 = vpop.f32.mrf.mxu0 }
 0x965   :  { %v1562_v9 = vpop.f32.mrf.mxu1 }
 0x966   :  { %2812 = vmatprep.mubr.msk.f32.mxu1 %vm489_vm2, %v1562_v9  ;;  %v2232_v9 = vrot.slane %v3215_v15, %v3423_v60 }
 0x967   :  { %v2804_v10 = vpop.f32.mrf.mxu1  ;;  %2813 = vmatmul.mubr.msk.f32.vlgmr.msra.gmra.mxu1 %vm489_vm2, %v1638_v21  ;;  %v2179_v21 = vsub.s32 %v2176_v57, %v3418_v54  ;;  %v2329_v57 = vunpack.c.0.s8 %v2328_v17 }
 0x968   :  { %2821 = vmatpush3.xpose.msk.msra.mxu1 %vm489_vm2, %v1807_v8  ;;  %2822 = vmatprep.mubr.msk.f32.mxu1 %vm3102_vm3, %v3100_v14  ;;  %v2239_v10 = vrot.slane %v2225_v63, %v3423_v60  ;;  %v3460_v63 = vsub.s32 %v2336_v58, %v3418_v54 }
 0x969   :  { %2830 = vmatprep.subr.mxu1 %v3100_v14 }
 0x96b   :  { %2823 = vmatmul.mubr.msk.f32.vlgmr.msra.gmra.mxu1 %vm489_vm2, %v1805_v11 }
 0x96c   :  { %2832 = vmatprep.mubr.msk.f32.mxu1 %vm3102_vm3, %v3100_v14 }
 0x9e8   :  { %v1884_v12 = vpop.xlane.xlu0 %1883 }
 0x9e9   :  { %v1888_v13 = vsub.f32 %v1800_v5, %v1884_v12 }
 0x9eb   :  { %v1890_v19 = vmul.f32 1.442695, %v1888_v13 }
 0x9ed   :  { %2886 = vpow2.f32 %v1890_v19 }
 0x9fa   :  { %v2887_v20 = vpop.eup %2886 }
 0x9fb   :  { %v1894_v23 = vsel %vm489_vm2, %v2887_v20, 0.0 }
 0x9fc   :  { %1895 = vadd.xlane.f32.xlu0 %v1894_v23  ;;  %v2224_v23 = vcombine.high %v2222_v4, %v2222_v4 }
 0xa27   :  { %v2814_v25 = vpop.f32.mrf.mxu1 }
 0xa28   :  { %v1725_v27 = vadd.f32 %v2814_v25, %v1307_v24 }
 0xa29   :  { %v1715_v28 = vpop.f32.mrf.mxu1 }
 0xa2a   :  { %v1724_v29 = vadd.f32 %v1715_v28, %v1302_v26  ;;  %v2241_v28 = vcombine.high %v2239_v10, %v2239_v10 }
 0xa2b   :  { %v1878_v30 = vpop.f32.mrf.mxu1 }
 0xa2c   :  { %v1885_v31 = vsel %vm489_vm2, %v1878_v30, -inf }
 0xa2d   :  { %1886 = vmax.xlane.f32.xlu1 %v1885_v31  ;;  %v2824_v32 = vpop.f32.mrf.mxu1 }
 0xa3e   :  { %1982 = vrot.lane.b32.xlu1 %v3262_v45, %s3104_s11 }
 0xa85   :  { %v1896_v33 = vpop.xlane.xlu0 %1895 }
 0xa86   :  { %2888 = vrcp.f32 %v1896_v33 }
 0xa93   :  { %v2889_v34 = vpop.eup %2888 }
 0xa94   :  { %v1902_v35 = vmul.f32 %v2889_v34, %v2887_v20  ;;  %v2223_v20 = vcombine.high %v2215_v3, %v2215_v3 }
 0xa96   :  { %1904 = vst.msk [vmem:[%s3505_s9 + $0x18] sm:$0xff] %vm489_vm2, %v1902_v35 }
 0xab6   :  { %v1887_v36 = vpop.xlane.xlu1 %1886 }
 0xab7   :  { %v1889_v37 = vsub.f32 %v1878_v30, %v1887_v36 }
 0xab9   :  { %v1892_v38 = vmul.f32 1.442695, %v1889_v37 }
 0xaba   :  { %v1983_v39 = vpop.permute.xlu1 %1982 }
 0xabb   :  { %2890 = vpow2.f32 %v1892_v38  ;;  %2831 = vmatpush3.msra.mxu1 %v1983_v39 }
 0xac8   :  { %v2891_v40 = vpop.eup %2890 }
 0xac9   :  { %v1897_v41 = vsel %vm489_vm2, %v2891_v40, 0.0 }
 0xaca   :  { %1898 = vadd.xlane.f32.xlu0 %v1897_v41 }
 0xae0   :  { %1906 = vrot.lane.b32.xlu0 %v3266_v46, %s3104_s11 }
 0xb53   :  { %v1899_v45 = vpop.xlane.xlu0 %1898 }
 0xb54   :  { %2892 = vrcp.f32 %v1899_v45 }
 0xb57   :  { %v1907_v42 = vpop.permute.xlu0 %1906 }
 0xb58   :  { %2826 = vmatpush3.msra.mxu0 %v1907_v42 }
 0xb59   :  { %2828 = vmatmul.mubr.msk.f32.vlgmr.msra.gmra.mxu0 %vm489_vm2, %v1902_v35  ;;  %2835 = vmatprep.subr.mxu0 %v2058_v47 }
 0xb5a   :  { %2836 = vmatpush3.msra.mxu0 %v2058_v47 }
 0xb61   :  { %v2893_v43 = vpop.eup %2892 }
 0xb62   :  { %v1903_v44 = vmul.f32 %v2893_v43, %v2891_v40 }
 0xb64   :  { %1905 = vst.msk [vmem:[%s3505_s9 + $0x38] sm:$0xff] %vm489_vm2, %v1903_v44  ;;  %2833 = vmatmul.mubr.msk.f32.vlgmr.msra.gmra.mxu1 %vm489_vm2, %v1903_v44  ;;  %s3111_s9 = smov [#allocation16]  }
 0xb65   :  { %s2574_s20 = sshll.u32 %s3111_s9, 4  ;;  %s2575_s20 = int_to_ptr.vmem [resolvable:$true] %s2574_s20 }
 0xb66   :  { %s3058_s21 = scalar_lea.vmem %s2575_s20, 256  ;;  %p3063_p13 = scmp.lt.s32.totalorder %s2575_s20, %s2575_s20 }
 0xb67   :  { %p3059_p12 = scmp.ne.s32.totalorder %s2575_s20, %s3058_s21  ;;  %p3064_p0 = scmp.lt.s32.totalorder %s3058_s21, %s3058_s21 }
 0xb69   :  { %p3065_p1 = por %p3064_p0, %p3063_p13 }
 0xb6b   :  { %p3066_p2 = pnand %p3065_p1, %p3059_p12 }
 0xc19   :  { %v1978_v48 = vpop.f32.mrf.mxu0 }
 0xc1a   :  { %2837 = vmatprep.mubr.msk.f32.mxu0 %vm489_vm2, %v1978_v48 }
 0xc1b   :  { %v2829_v46 = vpop.f32.mrf.mxu0 }
 0xc24   :  { %v2054_v49 = vpop.f32.mrf.mxu1 }
 0xc25   :  { %2838 = vmatmul.mubr.msk.f32.vlgmr.msra.gmra.mxu0 %vm489_vm2, %v2054_v49  ;;  %v3107_v49 = vmov 269488144  }
 0xc26   :  { %v2834_v50 = vpop.f32.mrf.mxu1 }
 0xc27   :  { %v2314_v50 = vunpack.c.l.s4 %v3107_v49 }
 0xce5   :  { %v2839_v55 = vpop.f32.mrf.mxu0 }
 0xce6   :  { %v2141_v56 = vadd.f32 %v2839_v55, %v1725_v27  ;;  %v2240_v27 = vcombine.high %v2232_v9, %v2232_v9  ;;  %v2315_v55 = vunpack.c.0.s8 %v2314_v50 }
 0xce7   :  { %v2131_v59 = vpop.f32.mrf.mxu0 }
 0xce8   :  { %v2157_v61 = vcombine.high %v2141_v56, %v3100_v14  ;;  %v2140_v62 = vadd.f32 %v2131_v59, %v1724_v29  ;;  %v2164_v0 = vrot.slane %v2141_v56, %v3423_v60  ;;  %v2322_v56 = vunpack.c.0.s8 %v2321_v18 }
 0xce9   :  { %v3451_v59 = vsub.s32 %v2315_v55, %v3418_v54 }
 0xcea   :  { %v2142_v1 = vcombine.high %v2140_v62, %v3100_v14  ;;  %v2149_v2 = vrot.slane %v2140_v62, %v3423_v60  ;;  %v2171_v5 = vrot.slane %v2157_v61, %v3423_v60  ;;  %v3454_v61 = vsub.s32 %v2322_v56, %v3418_v54 }
 0xceb   :  { %v3457_v62 = vsub.s32 %v2329_v57, %v3418_v54 }
 0xcec   :  { %v2156_v6 = vrot.slane %v2142_v1, %v3423_v60  ;;  %v2172_v7 = vcombine.low %v2149_v2, %v2164_v0  ;;  %v2173_v8 = vcombine.high %v2149_v2, %v2164_v0 }
 0xcee   :  { %v2180_v11 = vrot.slane %v2172_v7, %v2179_v21  ;;  %v2187_v12 = vrot.slane %v2173_v8, %v2179_v21  ;;  %v2188_v13 = vcombine.low %v2156_v6, %v2171_v5  ;;  %v2189_v19 = vcombine.high %v2156_v6, %v2171_v5 }
 0xcf0   :  { %v2196_v16 = vrot.slane %v2188_v13, %v2179_v21  ;;  %v2203_v24 = vrot.slane %v2189_v19, %v2179_v21  ;;  %v2204_v25 = vcombine.high %v2180_v11, %v3100_v14  ;;  %v2205_v26 = vcombine.high %v2187_v12, %v3100_v14 }
 0xcf1   :  { %v2250_v29 = vadd.f32 %v2215_v3, %v2180_v11  ;;  %v2252_v30 = vadd.f32 %v2222_v4, %v2187_v12 }
 0xcf2   :  { %v2251_v31 = vadd.f32 %v2223_v20, %v2204_v25  ;;  %v2253_v15 = vadd.f32 %v2224_v23, %v2205_v26  ;;  %v2206_v32 = vcombine.high %v2196_v16, %v3100_v14  ;;  %v2207_v33 = vcombine.high %v2203_v24, %v3100_v14 }
 0xcf3   :  { %v2254_v34 = vadd.f32 %v2232_v9, %v2196_v16  ;;  %v2256_v35 = vadd.f32 %v2239_v10, %v2203_v24 }
 0xcf4   :  { %v2266_v36 = vcombine.low %v2250_v29, %v2251_v31  ;;  %v2267_v37 = vcombine.low %v2252_v30, %v2253_v15  ;;  %v2255_v38 = vadd.f32 %v2240_v27, %v2206_v32  ;;  %v2257_v39 = vadd.f32 %v2241_v28, %v2207_v33 }
 0xcf6   :  { %v2274_v40 = vrot.slane %v2266_v36, %v3423_v60  ;;  %v2281_v41 = vrot.slane %v2267_v37, %v3423_v60  ;;  %v2283_v45 = vcombine.low %v2254_v34, %v2255_v38  ;;  %v2284_v42 = vcombine.low %v2256_v35, %v2257_v39 }
 0xcf8   :  { %v2282_v43 = vcombine.low %v2274_v40, %v2281_v41  ;;  %v2291_v44 = vrot.slane %v2283_v45, %v3423_v60  ;;  %v2298_v47 = vrot.slane %v2284_v42, %v3423_v60 }
 0xcfa   :  { %v2302_v48 = vsel %vm231_vm1, %v2282_v43, 0.0  ;;  %v2299_v14 = vcombine.low %v2291_v44, %v2298_v47 }
 0xcfb   :  { %2303 = vadd.xlane.f32.xlu1 %v2302_v48 }
 0xcfc   :  { %v2305_v46 = vsel %vm231_vm1, %v2299_v14, 0.0 }
 0xcfd   :  { %2306 = vadd.xlane.f32.xlu0 %v2305_v46 }
 0xd84   :  { %v2304_v0 = vpop.xlane.xlu1 %2303 }
 0xd85   :  { %v2309_v1 = vmul.f32 0.03125, %v2304_v0 }
 0xd86   :  { %v2307_v2 = vpop.xlane.xlu0 %2306 }
 0xd87   :  { %v2319_v21 = vrot.slane %v2309_v1, %v3451_v59  ;;  %v2326_v3 = vrot.slane %v2309_v1, %v3454_v61  ;;  %v2333_v4 = vrot.slane %v2309_v1, %v3457_v62  ;;  %v2340_v5 = vrot.slane %v2309_v1, %v3460_v63 }
 0xd88   :  { %v2310_v6 = vmul.f32 0.03125, %v2307_v2 }
 0xd89   :  { %v2377_v7 = vsub.f32 %v2250_v29, %v2319_v21  ;;  %v2378_v8 = vsub.f32 %v2251_v31, %v2326_v3  ;;  %v2379_v9 = vsub.f32 %v2252_v30, %v2333_v4  ;;  %v2380_v10 = vsub.f32 %v2253_v15, %v2340_v5 }
 0xd8a   :  { %v2347_v11 = vrot.slane %v2310_v6, %v3451_v59  ;;  %v2354_v54 = vrot.slane %v2310_v6, %v3454_v61  ;;  %v2361_v12 = vrot.slane %v2310_v6, %v3457_v62  ;;  %v2368_v13 = vrot.slane %v2310_v6, %v3460_v63 }
 0xd8b   :  { %v2385_v19 = vmul.f32 %v2377_v7, %v2377_v7  ;;  %v2386_v20 = vmul.f32 %v2378_v8, %v2378_v8  ;;  %v2387_v23 = vmul.f32 %v2379_v9, %v2379_v9  ;;  %v2388_v16 = vmul.f32 %v2380_v10, %v2380_v10 }
 0xd8c   :  { %v2381_v24 = vsub.f32 %v2254_v34, %v2347_v11  ;;  %v2382_v25 = vsub.f32 %v2255_v38, %v2354_v54  ;;  %v2383_v26 = vsub.f32 %v2256_v35, %v2361_v12  ;;  %v2384_v27 = vsub.f32 %v2257_v39, %v2368_v13 }
 0xd8d   :  { %v2401_v28 = vcombine.low %v2385_v19, %v2386_v20  ;;  %v2402_v29 = vcombine.low %v2387_v23, %v2388_v16 }
 0xd8e   :  { %v2389_v30 = vmul.f32 %v2381_v24, %v2381_v24  ;;  %v2390_v31 = vmul.f32 %v2382_v25, %v2382_v25  ;;  %v2391_v15 = vmul.f32 %v2383_v26, %v2383_v26  ;;  %v2392_v32 = vmul.f32 %v2384_v27, %v2384_v27 }
 0xd8f   :  { %v2409_v33 = vrot.slane %v2401_v28, %v3423_v60  ;;  %v2416_v36 = vrot.slane %v2402_v29, %v3423_v60 }
 0xd90   :  { %v2418_v37 = vcombine.low %v2389_v30, %v2390_v31  ;;  %v2419_v40 = vcombine.low %v2391_v15, %v2392_v32 }
 0xd91   :  { %v2417_v41 = vcombine.low %v2409_v33, %v2416_v36 }
 0xd92   :  { %v2426_v45 = vrot.slane %v2418_v37, %v3423_v60  ;;  %v2433_v34 = vrot.slane %v2419_v40, %v3423_v60 }
 0xd93   :  { %v2437_v35 = vsel %vm231_vm1, %v2417_v41, 0.0 }
 0xd94   :  { %2438 = vadd.xlane.f32.xlu0 %v2437_v35  ;;  %v2434_v38 = vcombine.low %v2426_v45, %v2433_v34 }
 0xd96   :  { %v2440_v39 = vsel %vm231_vm1, %v2434_v38, 0.0 }
 0xd97   :  { %2441 = vadd.xlane.f32.xlu1 %v2440_v39 }
 0xe1d   :  { %v2439_v42 = vpop.xlane.xlu0 %2438 }
 0xe1e   :  { %v2443_v43 = vmul.f32 0.03125, %v2439_v42 }
 0xe20   :  { %v2445_v44 = vadd.f32 1e-05, %v2443_v43  ;;  %v2442_v47 = vpop.xlane.xlu1 %2441 }
 0xe21   :  { %v2444_v48 = vmul.f32 0.03125, %v2442_v47 }
 0xe22   :  { %2894 = vrsqrt.f32 %v2445_v44 }
 0xe23   :  { %v2446_v14 = vadd.f32 1e-05, %v2444_v48 }
 0xe25   :  { %2896 = vrsqrt.f32 %v2446_v14 }
 0xe2f   :  { %v2895_v46 = vpop.eup %2894 }
 0xe30   :  { %v2457_v49 = vrot.slane %v2895_v46, %v3451_v59  ;;  %v2464_v50 = vrot.slane %v2895_v46, %v3454_v61  ;;  %v2471_v51 = vrot.slane %v2895_v46, %v3457_v62  ;;  %v2478_v18 = vrot.slane %v2895_v46, %v3460_v63 }
 0xe32   :  { %v2897_v52 = vpop.eup %2896  ;;  %v2515_v17 = vmul.f32 %v2457_v49, %v2377_v7  ;;  %v2516_v22 = vmul.f32 %v2464_v50, %v2378_v8  ;;  %v2517_v53 = vmul.f32 %v2471_v51, %v2379_v9  ;;  %v2518_v55 = vmul.f32 %v2478_v18, %v2380_v10 }
 0xe33   :  { %v2485_v56 = vrot.slane %v2897_v52, %v3451_v59  ;;  %v2492_v57 = vrot.slane %v2897_v52, %v3454_v61  ;;  %v2499_v58 = vrot.slane %v2897_v52, %v3457_v62  ;;  %v2506_v0 = vrot.slane %v2897_v52, %v3460_v63 }
 0xe34   :  { %v2531_v1 = vcombine.low %v2515_v17, %v2516_v22  ;;  %v2532_v2 = vcombine.low %v2517_v53, %v2518_v55 }
 0xe35   :  { %v2519_v21 = vmul.f32 %v2485_v56, %v2381_v24  ;;  %v2520_v3 = vmul.f32 %v2492_v57, %v2382_v25  ;;  %v2521_v4 = vmul.f32 %v2499_v58, %v2383_v26  ;;  %v2522_v5 = vmul.f32 %v2506_v0, %v2384_v27 }
 0xe36   :  { %v2539_v6 = vrot.slane %v2531_v1, %v3423_v60  ;;  %v2546_v7 = vrot.slane %v2532_v2, %v3423_v60 }
 0xe37   :  { %v2548_v8 = vcombine.low %v2519_v21, %v2520_v3  ;;  %v2549_v9 = vcombine.low %v2521_v4, %v2522_v5 }
 0xe38   :  { %v2547_v10 = vcombine.low %v2539_v6, %v2546_v7 }
 0xe39   :  { %v2556_v59 = vrot.slane %v2548_v8, %v3423_v60  ;;  %v2563_v61 = vrot.slane %v2549_v9, %v3423_v60 }
 0xe3a   :  { %2567 = vst.msk [vmem:[#allocation16] sm:$0xff] %vm231_vm1, %v2547_v10 }
 0xe3b   :  { %v2564_v62 = vcombine.low %v2556_v59, %v2563_v61 }
 0xe3d   :  { %2568 = vst.msk [vmem:[#allocation16 + $0x8] sm:$0xff] %vm231_vm1, %v2564_v62 }
 0xe3e   :  { %3069 = shalt.err (!%p3066_p2)
}
 0xe3f   :  { %2580 = dma.vmem_to_hbm [thread:$0]  %s2575_s20, 256, %s3504_s8, [#allocation4], %s3092_s14, %s3092_s14, %s3093_s15  }
 0xe40   :  { %3088 = dma.done.wait [#allocation4], 256  }
 0xe41   :  { %3089 = vsyncadd [#allocation4], 4294967040 }
 0xe42   :  { %2588 = vsyncpa [#allocation3], 1 }
 0xe43   :  { %2589 = vsyncpa [#allocation6], 1 }
 0xe44   :  { %2590 = vsyncpa [#allocation9], 1 }
 0xe45   :  { %2591 = vsyncpa [#allocation12], 1 }
 0xe46   :  { %2592 = vsyncpa [#allocation15], 1 }
 0xe47   :  { %2593 = vsyncpa [#allocation4], 1 }

</bundles_post_ra>
